<compile_context>
chip_gen: v7x
topology: tpu7x:2x2x1
jax: 0.10.0
libtpu: 0.0.40
codegen_flags: <defaults>
</compile_context>

<pallas_src>
import functools

import jax
import jax.numpy as jnp
from jax import lax
from jax.experimental import pallas as pl
from jax.experimental.pallas import tpu as pltpu

_NORMALIZE_EPS = 1e-12            # F.normalize default (module's self.eps is unused here)
_EPS_SQ = _NORMALIZE_EPS * _NORMALIZE_EPS


def _pairwise_cosine_kernel(x_ref, y_ref, inx_ref, iny_ref, o_ref, *, precision):
    # x_ref: (bt, tm, D), y_ref: (bt, tn, D)
    # inx_ref: (bt, tm, 1) f32, iny_ref: (bt, 1, tn) f32, o_ref: (bt, tm, tn)
    # Contraction on dim 2 of both operands (no transposed y copy), f32 accumulation.
    sim = lax.dot_general(
        x_ref[...], y_ref[...],
        dimension_numbers=(((2,), (2,)), ((0,), (0,))),
        preferred_element_type=jnp.float32,
        precision=precision,
    )                                                       # (bt, tm, tn) f32
    # Post-matmul normalization == normalize-then-dot, but it is two broadcast
    # multiplies on the accumulator instead of per-step norm recomputation.
    o_ref[...] = (sim * inx_ref[...] * iny_ref[...]).astype(o_ref.dtype)


def _round_up(a, b):
    return -(-a // b) * b


def _sublane_multiple(dtype):
    return max(8, 32 // jnp.dtype(dtype).itemsize)          # 8 f32, 16 bf16, 32 int8


def _padded_block_bytes(block_shape, dtype):
    """VMEM footprint of one block, rounded to native (sublane, 128) tiles."""
    *lead, s, l = block_shape
    s_p = _round_up(max(int(s), 1), _sublane_multiple(dtype))
    l_p = _round_up(max(int(l), 1), 128)
    n = 1
    for d in lead:
        n *= int(d)
    return n * s_p * l_p * jnp.dtype(dtype).itemsize


def _vmem_capacity_bytes():
    try:
        info = pltpu.get_tpu_info()
        for name in ("vmem_capacity_bytes", "vmem_size_bytes", "vmem_bytes"):
            v = getattr(info, name, None)
            if v:
                return int(v)
    except Exception:
        pass
    return 64 << 20                                          # conservative (v7x)


def _inv_row_norms(v):
    vf = v.astype(jnp.float32)
    # v * rsqrt(max(||v||^2, eps^2)) == v / max(||v||, eps)  (F.normalize semantics)
    return lax.rsqrt(jnp.maximum(jnp.sum(vf * vf, axis=-1), _EPS_SQ))


def pairwise_cosine(x, y, *, tm=None, tn=256, out_dtype=None, precision=None,
                    batch_tile=None):
    """x: (B, M, D), y: (B, N, D) -> (B, M, N) cosine-similarity matrices."""
    B, M, D = x.shape
    By, N, Dy = y.shape
    assert B == By and D == Dy, (x.shape, y.shape)
    if out_dtype is None:
        out_dtype = jnp.result_type(x.dtype, y.dtype)

    # Degenerate shapes (incl. torch's x.shape[1] == 0 branch): all zeros.
    if M == 0 or N == 0 or D == 0:
        return jnp.zeros((B, M, N), dtype=out_dtype)

    # Deliberate MXU precision: exact f32 path by default for f32 inputs.
    if precision is None and x.dtype == jnp.float32 and y.dtype == jnp.float32:
        precision = lax.Precision.HIGHEST

    # ---- chip-aware budgets --------------------------------------------------
    vmem_cap = _vmem_capacity_bytes()
    big_vmem = vmem_cap >= (96 << 20)               # v5e/v6e (128 MiB) vs v7x (64 MiB)
    clamp_hi = (96 << 20) if big_vmem else (48 << 20)
    if tm is None:
        tm = 512 if big_vmem else 256               # bigger tm -> fewer y re-streams

    # ---- tile sizing ---------------------------------------------------------
    # tm: output sublane axis -> multiple of 8 (or the full M).
    # tn: output lane axis    -> multiple of 128 (or the full N).
    tm_eff = M if M <= tm else _round_up(tm, 8)
    tn_eff = N if N <= tn else _round_up(tn, 128)

    def tile_bytes(bt_, tm_, tn_):
        return (_padded_block_bytes((bt_, tm_, D), x.dtype)
                + _padded_block_bytes((bt_, tn_, D), y.dtype)
                + _padded_block_bytes((bt_, tm_, 1), jnp.float32)
                + _padded_block_bytes((bt_, 1, tn_), jnp.float32)
                + _padded_block_bytes((bt_, tm_, tn_), out_dtype))

    # ---- batch fusion for tiny per-batch problems ----------------------------
    # If one (tm, tn) tile covers a whole batch item, fuse several batch items
    # per grid step (amortizes the ~0.35 us/step overhead).  A ragged last
    # batch block is fine: its OOB output rows are dropped on writeback.
    bt = 1
    if batch_tile is not None:
        bt = max(1, min(int(batch_tile), B))
    elif tm_eff >= M and tn_eff >= N:
        step_cap = (8 << 20) if big_vmem else (6 << 20)
        per_batch = tile_bytes(1, tm_eff, tn_eff)
        for cand in range(min(B, 16), 1, -1):
            if cand * per_batch <= step_cap:
                bt = cand
                break

    # ---- large-D / VMEM guard: shrink until double-buffered footprint fits ---
    work_budget = clamp_hi - (8 << 20)
    while 2 * tile_bytes(bt, tm_eff, tn_eff) > work_budget:
        if bt > 1:
            bt = max(1, bt // 2)
        elif tm_eff > 64:
            tm_eff = max(64, _round_up(tm_eff // 2, 8))
        elif tn_eff > 128:
            tn_eff = max(128, _round_up(tn_eff // 2, 128))
        elif tm_eff > 8:
            tm_eff = max(8, _round_up(tm_eff // 2, 8))
        else:
            break  # TODO(synk): K-axis accumulation for pathological D

    # n innermost: x tile's block index constant across n -> stays resident.
    grid = (pl.cdiv(B, bt), pl.cdiv(M, tm_eff), pl.cdiv(N, tn_eff))

    # Inverse row norms, computed once (cheap XLA pass over x / y).
    inv_nx = _inv_row_norms(x)[..., None]        # (B, M, 1) f32
    inv_ny = _inv_row_norms(y)[:, None, :]       # (B, 1, N) f32

    vmem_limit = int(min(max(2 * tile_bytes(bt, tm_eff, tn_eff) + (8 << 20), 32 << 20),
                         clamp_hi))

    grid_spec = pltpu.PrefetchScalarGridSpec(
        num_scalar_prefetch=0,
        grid=grid,
        in_specs=[
            pl.BlockSpec((bt, tm_eff, D), lambda b, i, j: (b, i, 0)),
            pl.BlockSpec((bt, tn_eff, D), lambda b, i, j: (b, j, 0)),
            pl.BlockSpec((bt, tm_eff, 1), lambda b, i, j: (b, i, 0)),
            pl.BlockSpec((bt, 1, tn_eff), lambda b, i, j: (b, 0, j)),
        ],
        out_specs=pl.BlockSpec((bt, tm_eff, tn_eff), lambda b, i, j: (b, i, j)),
    )
    return pl.pallas_call(
        functools.partial(_pairwise_cosine_kernel, precision=precision),
        out_shape=jax.ShapeDtypeStruct((B, M, N), out_dtype),
        grid_spec=grid_spec,
        compiler_params=pltpu.CompilerParams(
            dimension_semantics=("parallel", "parallel", "parallel"),
            vmem_limit_bytes=vmem_limit,
        ),
    )(x, y, inv_nx, inv_ny)


def _pairwise_cosine_ref(x, y):
    def norm(v):
        v = v.astype(jnp.float32)
        n = jnp.sqrt(jnp.sum(v * v, axis=-1, keepdims=True))
        return v / jnp.maximum(n, _NORMALIZE_EPS)
    return jnp.einsum("bmd,bnd->bmn", norm(x), norm(y),
                      precision=lax.Precision.HIGHEST)


if __name__ == "__main__":
    key = jax.random.PRNGKey(0)

    # (B, M, N, D, kwargs):
    #  case 0 — tiny per-batch, odd B     -> batch fusion (bt=3), single grid step
    #  case 1 — single tile, ragged N=200 -> full-dim lane block, no pad / slice
    #  case 2 — multi-tile ragged M/N     -> cdiv grid, OOB rows/cols dropped on writeback
    #  case 3 — forced batch remainder    -> bt=2 over B=5 (ragged leading batch block)
    cases = [
        (3, 8, 8, 32, dict()),
        (2, 40, 200, 64, dict()),
        (2, 300, 260, 32, dict(tm=128, tn=128)),
        (5, 16, 16, 32, dict(batch_tile=2)),
    ]
    for idx, (B, M, N, D, kw) in enumerate(cases):
        kx, ky = jax.random.split(jax.random.fold_in(key, idx))
        x = jax.random.normal(kx, (B, M, D), dtype=jnp.float32)
        y = jax.random.normal(ky, (B, N, D), dtype=jnp.float32)

        out = jax.block_until_ready(pairwise_cosine(x, y, **kw))
        ref = _pairwise_cosine_ref(x, y)

        assert out.shape == (B, M, N), (out.shape, (B, M, N))
        assert jnp.allclose(out, ref, atol=1e-5, rtol=1e-5), (
            idx, float(jnp.max(jnp.abs(out - ref))))

    print("KERNEL_OK")
</pallas_src>

<mosaic_0001>
module attributes {stable_mosaic.version = 11 : i64} {
  func.func @_pairwise_cosine_kernel(%arg0: i32, %arg1: i32, %arg2: i32, %arg3: memref<3x8x32xf32, #tpu.memory_space<vmem>>, %arg4: memref<3x8x32xf32, #tpu.memory_space<vmem>>, %arg5: memref<3x8x1xf32, #tpu.memory_space<vmem>>, %arg6: memref<3x1x8xf32, #tpu.memory_space<vmem>>, %arg7: memref<3x8x8xf32, #tpu.memory_space<vmem>>) attributes {dimension_semantics = [#tpu.dimension_semantics<parallel>, #tpu.dimension_semantics<parallel>, #tpu.dimension_semantics<parallel>], iteration_bounds = array<i64: 1, 1, 1>, scalar_prefetch = 0 : i64, scratch_operands = 0 : i64, tpu.core_type = #tpu.core_type<tc>, window_params = [{transform_indices = @transform_0, window_bounds = array<i64: 3, 8, 32>}, {transform_indices = @transform_1, window_bounds = array<i64: 3, 8, 32>}, {transform_indices = @transform_2, window_bounds = array<i64: 3, 8, 1>}, {transform_indices = @transform_3, window_bounds = array<i64: 3, 1, 8>}, {transform_indices = @transform_4, window_bounds = array<i64: 3, 8, 8>}]} {
    %c0 = arith.constant 0 : index
    %c0_0 = arith.constant 0 : index
    %c0_1 = arith.constant 0 : index
    %0 = vector.load %arg3[%c0, %c0_0, %c0_1] : memref<3x8x32xf32, #tpu.memory_space<vmem>>, vector<3x8x32xf32>
    %c0_2 = arith.constant 0 : index
    %c0_3 = arith.constant 0 : index
    %c0_4 = arith.constant 0 : index
    %1 = vector.load %arg4[%c0_2, %c0_3, %c0_4] : memref<3x8x32xf32, #tpu.memory_space<vmem>>, vector<3x8x32xf32>
    %cst = arith.constant dense<0.000000e+00> : vector<3x8x8xf32>
    %2 = tpu.matmul %0, %1, %cst {dimension_numbers = #tpu.dot_dimension_numbers<[2], [2], [1], [1], [0, 0, 0, 1, 1, 1], [0], [0]>, precision = #tpu.contract_precision<fp32>} : vector<3x8x32xf32>, vector<3x8x32xf32>, vector<3x8x8xf32> -> vector<3x8x8xf32>
    %c0_5 = arith.constant 0 : index
    %c0_6 = arith.constant 0 : index
    %c0_7 = arith.constant 0 : index
    %3 = vector.load %arg5[%c0_5, %c0_6, %c0_7] : memref<3x8x1xf32, #tpu.memory_space<vmem>>, vector<3x8x1xf32>
    %4 = vector.broadcast %3 : vector<3x8x1xf32> to vector<3x8x8xf32>
    %5 = arith.mulf %2, %4 : vector<3x8x8xf32>
    %c0_8 = arith.constant 0 : index
    %c0_9 = arith.constant 0 : index
    %c0_10 = arith.constant 0 : index
    %6 = vector.load %arg6[%c0_8, %c0_9, %c0_10] : memref<3x1x8xf32, #tpu.memory_space<vmem>>, vector<3x1x8xf32>
    %7 = vector.broadcast %6 : vector<3x1x8xf32> to vector<3x8x8xf32>
    %8 = arith.mulf %5, %7 : vector<3x8x8xf32>
    %c0_11 = arith.constant 0 : index
    %c0_12 = arith.constant 0 : index
    %c0_13 = arith.constant 0 : index
    %9 = vector.load %arg7[%c0_11, %c0_12, %c0_13] : memref<3x8x8xf32, #tpu.memory_space<vmem>>, vector<3x8x8xf32>
    tpu.vector_store %arg7[%c0_11, %c0_12, %c0_13], %8 {strides = array<i32>} : memref<3x8x8xf32, #tpu.memory_space<vmem>>, vector<3x8x8xf32>,
    return
  }
  func.func @transform_0(%arg0: i32, %arg1: i32, %arg2: i32) -> (i32, i32, i32) {
    %c0_i32 = arith.constant 0 : i32
    %c0_i32_0 = arith.constant 0 : i32
    return %arg0, %arg1, %c0_i32 : i32, i32, i32
  }
  func.func @transform_1(%arg0: i32, %arg1: i32, %arg2: i32) -> (i32, i32, i32) {
    %c0_i32 = arith.constant 0 : i32
    %c0_i32_0 = arith.constant 0 : i32
    return %arg0, %arg2, %c0_i32 : i32, i32, i32
  }
  func.func @transform_2(%arg0: i32, %arg1: i32, %arg2: i32) -> (i32, i32, i32) {
    %c0_i32 = arith.constant 0 : i32
    %c0_i32_0 = arith.constant 0 : i32
    return %arg0, %arg1, %c0_i32 : i32, i32, i32
  }
  func.func @transform_3(%arg0: i32, %arg1: i32, %arg2: i32) -> (i32, i32, i32) {
    %c0_i32 = arith.constant 0 : i32
    %c0_i32_0 = arith.constant 0 : i32
    return %arg0, %c0_i32, %arg2 : i32, i32, i32
  }
  func.func @transform_4(%arg0: i32, %arg1: i32, %arg2: i32) -> (i32, i32, i32) {
    %c0_i32 = arith.constant 0 : i32
    return %arg0, %arg1, %arg2 : i32, i32, i32
  }
}

</mosaic_0001>

<bundles_post_ra>
// kernel: tpu_custom_call.1
= control target key start
LH: loop header
LB: loop body
LE: loop exit
PB: predicated region body
PF: predicated region fallthrough
CT: control target
= control target key end

     0   :  { %9 = vsyncpa [#allocation3], 0  ;;  %s1852_s0 = inlined_call_operand.vmem [shape: f32[3,8,32], index: 0, kind: input, shape index: {}]   ;;  %s1853_s1 = inlined_call_operand.hbm [shape: f32[3,8,32], index: 1, kind: input, shape index: {}]   ;;  %s1854_s2 = inlined_call_operand.vmem [shape: f32[3,8,1], index: 2, kind: input, shape index: {}]   ;;  %s1855_s3 = inlined_call_operand.vmem [shape: f32[3,1,8], index: 3, kind: input, shape index: {}]   ;;  %s1856_s4 = inlined_call_operand.hbm [shape: f32[3,8,8], index: 4, kind: output, shape index: {}]  }
   0x1   :  { %10 = vsyncpa [#allocation4], 0  ;;  %s1676_s15 = smov [#allocation2]   ;;  %s1628_s19 = scalar_lea.hbm %s1853_s1, 384 }
   0x2   :  { %s18_s16 = sshll.u32 %s1676_s15, 4  ;;  %p1629_p0 = scmp.ne.s32.totalorder %s1853_s1, %s1628_s19  ;;  %s19_s16 = int_to_ptr.vmem [resolvable:$true] %s18_s16 }
   0x3   :  { %p1632_p1 = scmp.lt.u32.totalorder %s1628_s19, %s1853_s1 }
   0x5   :  { %p1634_p2 = pnand %p1632_p1, %p1629_p0 }
   0x7   :  { %1637 = shalt.err (!%p1634_p2)
}
   0x8   :  { %s1638_s24 = scalar_lea.vmem %s19_s16, 384  ;;  %p1643_p4 = scmp.lt.s32.totalorder %s19_s16, %s19_s16 }
   0x9   :  { %p1639_p3 = scmp.ne.s32.totalorder %s19_s16, %s1638_s24  ;;  %p1644_p5 = scmp.lt.s32.totalorder %s1638_s24, %s1638_s24 }
   0xb   :  { %p1645_p6 = por %p1644_p5, %p1643_p4 }
   0xd   :  { %p1646_p7 = pnand %p1645_p6, %p1639_p3 }
   0xf   :  { %1649 = shalt.err (!%p1646_p7)
}
  0x10   :  { %s1677_s25 = smov 128   ;;  %s1678_s26 = smov 8  }
  0x11   :  { %24 = dma.hbm_to_vmem [thread:$0]  %s1853_s1, 384, %s19_s16, [#allocation3], %s1677_s25, %s1677_s25, %s1678_s26  }
  0x12   :  { %1672 = dma.done.wait [#allocation3], 384  }
  0x13   :  { %1673 = vsyncadd [#allocation3], 4294966912  ;;  %v1679_v0 = vmov 0.0   ;;  %vm1680_vm0 = vmmov 0   ;;  %v1681_v1 = vmov 0   ;;  %vm38_vm1 = vcmask 261120  }
  0x14   :  { %1515 = vmatprep.subr.mxu0 %v1679_v0  ;;  %1500 = vmatprep.subr.mxu1 %v1679_v0  ;;  %v35_v2 = vld [vmem:[#allocation2] sm:$0xff]  ;;  %v34_v8 = vld [vmem:[%s1852_s0 + $0x10] sm:$0xff]  ;;  %v1396_v14 = vld [vmem:[%s1854_s2 + $0x8] sm:$0xff]  ;;  %vm1440_vm2 = vcmask 64512   ;;  %s1682_s18 = smov [#allocation5]  }
  0x15   :  { %1517 = vmatprep.mubr.msk.f32.mxu0 %vm1680_vm0, %v1679_v0  ;;  %1502 = vmatprep.mubr.msk.f32.mxu1 %vm1680_vm0, %v1679_v0  ;;  %v32_v3 = vld [vmem:[%s1852_s0] sm:$0xff]  ;;  %v43_v4 = vsel %vm38_vm1, %v35_v2, 0  ;;  %v1397_v10 = vld [vmem:[%s1854_s2 + $0x10] sm:$0xff]  ;;  %v944_v15 = vsel %vm38_vm1, %v34_v8, 0  ;;  %v33_v18 = vld [vmem:[%s1852_s0 + $0x8] sm:$0xff]  ;;  %s1449_s19 = sshll.u32 %s1682_s18, 4  ;;  %s1450_s19 = int_to_ptr.vmem [resolvable:$true] %s1449_s19 }
  0x16   :  { %1626 = vset.pattern.permute.xlu0 %v1681_v1  ;;  %1627 = vset.pattern.permute.xlu1 %v1681_v1  ;;  %v40_v5 = vsel %vm38_vm1, %v32_v3, 0  ;;  %v46_v6 = vand.u32 4294901760, %v43_v4  ;;  %v1395_v9 = vld [vmem:[%s1854_s2] sm:$0xff]  ;;  %v37_v13 = vld [vmem:[#allocation2 + $0x10] sm:$0xff]  ;;  %v36_v20 = vld [vmem:[#allocation2 + $0x8] sm:$0xff]  ;;  %v1753_v23 = vand.u32 4294901760, %v944_v15  ;;  %p1655_p9 = scmp.lt.s32.totalorder %s1450_s19, %s1450_s19 }
  0x17   :  { %v111_v7 = vand.u32 4294901760, %v40_v5  ;;  %1400 = vperm.xlu0 %1626, %v1395_v9   ;;  %1410 = vperm.xlu1 %1627, %v1397_v10   ;;  %v947_v19 = vsel %vm38_vm1, %v37_v13, 0  ;;  %v492_v24 = vsel %vm38_vm1, %v33_v18, 0  ;;  %v495_v28 = vsel %vm38_vm1, %v36_v20, 0  ;;  %v1461_v53 = vld [vmem:[%s1855_s3] ss:$0 sm:$0xff] }
  0x18   :  { %v123_v11 = vsub.f32 %v43_v4, %v46_v6  ;;  %1516 = vmatpush3.xpose.msra.mxu0 %v46_v6  ;;  %1501 = vmatpush3.xpose.msra.mxu1 %v46_v6  ;;  %v1759_v27 = vand.u32 4294901760, %v947_v19  ;;  %v1016_v29 = vsub.f32 %v944_v15, %v1753_v23  ;;  %v1763_v30 = vand.u32 4294901760, %v492_v24  ;;  %v1463_v58 = vld [vmem:[%s1855_s3 + $0x2] ss:$0 sm:$0xff]  ;;  %s1650_s20 = scalar_lea.vmem %s1450_s19, 384 }
  0x19   :  { %v112_v12 = vsub.f32 %v40_v5, %v111_v7  ;;  %1505 = vmatprep.subr.mxu1 %v1679_v0  ;;  %1520 = vmatprep.subr.mxu0 %v1679_v0  ;;  %v1767_v31 = vand.u32 4294901760, %v495_v28  ;;  %p1651_p8 = scmp.ne.s32.totalorder %s1450_s19, %s1650_s20  ;;  %p1656_p10 = scmp.lt.s32.totalorder %s1650_s20, %s1650_s20 }
  0x1a   :  { %v124_v17 = vand.u32 4294901760, %v123_v11  ;;  %v1027_v32 = vsub.f32 %v947_v19, %v1759_v27  ;;  %v1017_v33 = vand.u32 4294901760, %v1016_v29  ;;  %v564_v34 = vsub.f32 %v492_v24, %v1763_v30 }
  0x1b   :  { %v113_v16 = vand.u32 4294901760, %v112_v12  ;;  %1405 = vperm.xlu0 %1626, %v1396_v14   ;;  %v575_v35 = vsub.f32 %v495_v28, %v1767_v31  ;;  %p1657_p11 = por %p1656_p10, %p1655_p9 }
  0x1c   :  { %v125_v22 = vsub.f32 %v123_v11, %v124_v17  ;;  %v1028_v36 = vand.u32 4294901760, %v1027_v32  ;;  %v1018_v37 = vsub.f32 %v1016_v29, %v1017_v33  ;;  %v565_v38 = vand.u32 4294901760, %v564_v34 }
  0x1d   :  { %1518 = vmatmul.mubr.f32.vlgmr.msra.gmra.mrb[0].mxu0 %v113_v16  ;;  %v114_v21 = vsub.f32 %v112_v12, %v113_v16  ;;  %v576_v39 = vand.u32 4294901760, %v575_v35  ;;  %p1658_p12 = pnand %p1657_p11, %p1651_p8 }
  0x1e   :  { %1521 = vmatpush3.xpose.msra.mxu0 %v124_v17  ;;  %1522 = vmatprep.mubr.msk.f32.mxu0 %vm1680_vm0, %v1679_v0  ;;  %v126_v26 = vand.u32 4294901760, %v125_v22  ;;  %v1029_v40 = vsub.f32 %v1027_v32, %v1028_v36  ;;  %v1019_v41 = vand.u32 4294901760, %v1018_v37  ;;  %v566_v42 = vsub.f32 %v564_v34, %v565_v38 }
  0x1f   :  { %v115_v25 = vand.u32 4294901760, %v114_v21  ;;  %1525 = vmatprep.subr.mxu0 %v1679_v0  ;;  %v577_v43 = vsub.f32 %v575_v35, %v576_v39 }
  0x20   :  { %v1030_v44 = vand.u32 4294901760, %v1029_v40  ;;  %v567_v45 = vand.u32 4294901760, %v566_v42 }
  0x21   :  { %1503 = vmatmul.mubr.f32.vlgmr.msra.gmra.mrb[0].mxu1 %v115_v25  ;;  %v578_v46 = vand.u32 4294901760, %v577_v43 }
  0x22   :  { %1506 = vmatpush3.xpose.msra.mxu1 %v126_v26  ;;  %1507 = vmatprep.mubr.msk.f32.mxu1 %vm1680_vm0, %v1679_v0 }
  0x23   :  { %1510 = vmatprep.subr.mxu1 %v1679_v0 }
  0x25   :  { %1523 = vmatmul.mubr.f32.vlgmr.msra.gmra.mrb[0].mxu0 %v111_v7 }
  0x26   :  { %1526 = vmatpush3.xpose.msra.mxu0 %v46_v6  ;;  %1527 = vmatprep.mubr.msk.f32.mxu0 %vm1680_vm0, %v1679_v0 }
  0x27   :  { %1560 = vmatprep.subr.mxu0 %v1679_v0 }
  0x29   :  { %1508 = vmatmul.mubr.f32.vlgmr.msra.gmra.mrb[0].mxu1 %v111_v7 }
  0x2a   :  { %1511 = vmatpush3.xpose.msra.mxu1 %v123_v11  ;;  %1512 = vmatprep.mubr.msk.f32.mxu1 %vm1680_vm0, %v1679_v0 }
  0x2b   :  { %1530 = vmatprep.subr.mxu1 %v1679_v0 }
  0x2d   :  { %1528 = vmatmul.mubr.f32.vlgmr.msra.gmra.mrb[0].mxu0 %v111_v7 }
  0x2e   :  { %1561 = vmatpush3.xpose.msra.mxu0 %v1759_v27  ;;  %1562 = vmatprep.mubr.msk.f32.mxu0 %vm1680_vm0, %v1679_v0 }
  0x2f   :  { %1565 = vmatprep.subr.mxu0 %v1679_v0 }
  0x31   :  { %1513 = vmatmul.mubr.f32.vlgmr.msra.gmra.mrb[0].mxu1 %v112_v12  ;;  %1563 = vmatmul.mubr.f32.vlgmr.msra.gmra.mrb[2].mxu0 %v1019_v41 }
  0x32   :  { %1531 = vmatpush3.xpose.msra.mxu1 %v1767_v31  ;;  %1532 = vmatprep.mubr.msk.f32.mxu1 %vm1680_vm0, %v1679_v0 }
  0x33   :  { %1535 = vmatprep.subr.mxu1 %v1679_v0  ;;  %1566 = vmatpush3.xpose.msra.mxu0 %v1030_v44 }
  0x34   :  { %1567 = vmatprep.mubr.msk.f32.mxu0 %vm1680_vm0, %v1679_v0  ;;  %1570 = vmatprep.subr.mxu0 %v1679_v0 }
  0x35   :  { %1533 = vmatmul.mubr.f32.vlgmr.msra.gmra.mrb[2].mxu1 %v567_v45 }
  0x36   :  { %1536 = vmatpush3.xpose.msra.mxu1 %v578_v46  ;;  %1537 = vmatprep.mubr.msk.f32.mxu1 %vm1680_vm0, %v1679_v0 }
  0x37   :  { %1540 = vmatprep.subr.mxu1 %v1679_v0 }
  0x39   :  { %1568 = vmatmul.mubr.f32.vlgmr.msra.gmra.mrb[2].mxu0 %v1753_v23 }
  0x3a   :  { %1571 = vmatpush3.xpose.msra.mxu0 %v1027_v32  ;;  %1572 = vmatprep.mubr.msk.f32.mxu0 %vm1680_vm0, %v1679_v0 }
  0x3b   :  { %1575 = vmatprep.subr.mxu0 %v1679_v0 }
  0x3d   :  { %1538 = vmatmul.mubr.f32.vlgmr.msra.gmra.mrb[2].mxu1 %v1763_v30 }
  0x3e   :  { %1541 = vmatpush3.xpose.msra.mxu1 %v575_v35  ;;  %1542 = vmatprep.mubr.msk.f32.mxu1 %vm1680_vm0, %v1679_v0 }
  0x3f   :  { %1545 = vmatprep.subr.mxu1 %v1679_v0 }
  0x41   :  { %1573 = vmatmul.mubr.f32.vlgmr.msra.gmra.mrb[2].mxu0 %v1016_v29 }
  0x42   :  { %1576 = vmatpush3.xpose.msra.mxu0 %v1759_v27  ;;  %1577 = vmatprep.mubr.msk.f32.mxu0 %vm1680_vm0, %v1679_v0 }
  0x43   :  { %1580 = vmatprep.subr.mxu0 %v1679_v0 }
  0x45   :  { %1543 = vmatmul.mubr.f32.vlgmr.msra.gmra.mrb[2].mxu1 %v564_v34 }
  0x46   :  { %1546 = vmatpush3.xpose.msra.mxu1 %v1767_v31  ;;  %1547 = vmatprep.mubr.msk.f32.mxu1 %vm1680_vm0, %v1679_v0 }
  0x47   :  { %1550 = vmatprep.subr.mxu1 %v1679_v0 }
  0x49   :  { %1578 = vmatmul.mubr.f32.vlgmr.msra.gmra.mrb[2].mxu0 %v1017_v33 }
  0x4a   :  { %1581 = vmatpush3.xpose.msra.mxu0 %v1028_v36  ;;  %1582 = vmatprep.mubr.msk.f32.mxu0 %vm1680_vm0, %v1679_v0 }
  0x4b   :  { %1585 = vmatprep.subr.mxu0 %v1679_v0 }
  0x4d   :  { %1548 = vmatmul.mubr.f32.vlgmr.msra.gmra.mrb[2].mxu1 %v565_v38 }
  0x4e   :  { %1551 = vmatpush3.xpose.msra.mxu1 %v576_v39  ;;  %1552 = vmatprep.mubr.msk.f32.mxu1 %vm1680_vm0, %v1679_v0 }
  0x4f   :  { %1555 = vmatprep.subr.mxu1 %v1679_v0 }
  0x51   :  { %1583 = vmatmul.mubr.f32.vlgmr.msra.gmra.mrb[2].mxu0 %v1753_v23 }
  0x52   :  { %1586 = vmatpush3.xpose.msra.mxu0 %v1759_v27  ;;  %1587 = vmatprep.mubr.msk.f32.mxu0 %vm1680_vm0, %v1679_v0 }
  0x55   :  { %1553 = vmatmul.mubr.f32.vlgmr.msra.gmra.mrb[2].mxu1 %v1763_v30 }
  0x56   :  { %1556 = vmatpush3.xpose.msra.mxu1 %v1767_v31  ;;  %1557 = vmatprep.mubr.msk.f32.mxu1 %vm1680_vm0, %v1679_v0  ;;  %v1462_v0 = vld [vmem:[%s1855_s3 + $0x1] ss:$0 sm:$0xff] }
  0x59   :  { %1588 = vmatmul.mubr.f32.vlgmr.msra.gmra.mrb[2].mxu0 %v1753_v23 }
  0x5d   :  { %1558 = vmatmul.mubr.f32.vlgmr.msra.gmra.mrb[2].mxu1 %v1763_v30 }
  0x96   :  { %v1401_v50 = vpop.permute.xlu0 %1400  ;;  %v1411_v56 = vpop.permute.xlu1 %1410 }
  0x9a   :  { %v1406_v62 = vpop.permute.xlu0 %1405 }
 0x100   :  { %v487_v47 = vpop.f32.mrb[0].mxu0 }
 0x101   :  { %v1529_v48 = vpop.f32.mrb[1].mxu0 }
 0x104   :  { %v267_v49 = vpop.f32.mrb[0].mxu1 }
 0x105   :  { %v1590_v51 = vadd.f32 %v487_v47, %v267_v49  ;;  %v1514_v52 = vpop.f32.mrb[1].mxu1 }
 0x107   :  { %v1413_v54 = vmul.f32 %v1590_v51, %v1401_v50 }
 0x109   :  { %v1437_v55 = vmul.f32 %v1461_v53, %v1413_v54 }
 0x10b   :  { %1441 = vst.msk [vmem:[#allocation5] sm:$0xff] %vm1440_vm2, %v1437_v55 }
 0x12c   :  { %v1391_v57 = vpop.f32.mrb[2].mxu0 }
 0x12d   :  { %v1415_v59 = vmul.f32 %v1411_v56, %v1391_v57  ;;  %v1589_v60 = vpop.f32.mrb[3].mxu0 }
 0x12f   :  { %v1439_v61 = vmul.f32 %v1463_v58, %v1415_v59 }
 0x130   :  { %v939_v63 = vpop.f32.mrb[2].mxu1 }
 0x131   :  { %v1414_v1 = vmul.f32 %v1406_v62, %v939_v63  ;;  %v1559_v2 = vpop.f32.mrb[3].mxu1  ;;  %1443 = vst.msk [vmem:[#allocation5 + $0x10] sm:$0xff] %vm1440_vm2, %v1439_v61 }
 0x133   :  { %v1438_v3 = vmul.f32 %v1462_v0, %v1414_v1 }
 0x135   :  { %1442 = vst.msk [vmem:[#allocation5 + $0x8] sm:$0xff] %vm1440_vm2, %v1438_v3 }
 0x136   :  { %1661 = shalt.err (!%p1658_p12)
}
 0x137   :  { %s1662_s3 = scalar_lea.hbm %s1856_s4, 384 }
 0x138   :  { %p1663_p13 = scmp.ne.s32.totalorder %s1856_s4, %s1662_s3  ;;  %p1666_p0 = scmp.lt.u32.totalorder %s1662_s3, %s1856_s4 }
 0x13a   :  { %p1668_p1 = pnand %p1666_p0, %p1663_p13 }
 0x13c   :  { %1671 = shalt.err (!%p1668_p1)
}
 0x13d   :  { %1455 = dma.vmem_to_hbm [thread:$0]  %s1450_s19, 384, %s1856_s4, [#allocation4], %s1677_s25, %s1677_s25, %s1678_s26  }
 0x13e   :  { %1674 = dma.done.wait [#allocation4], 384  }
 0x13f   :  { %1675 = vsyncadd [#allocation4], 4294966912 }
 0x140   :  { %1459 = vsyncpa [#allocation3], 1 }
 0x141   :  { %1460 = vsyncpa [#allocation4], 1 }

</bundles_post_ra>
